<compile_context>
chip_gen: v7x
topology: tpu7x:2x2x1
jax: 0.10.0
libtpu: 0.0.40
codegen_flags: <defaults>
</compile_context>

<pallas_src>
import functools

import jax
import jax.numpy as jnp
from jax import lax
from jax.experimental import pallas as pl
from jax.experimental.pallas import tpu as pltpu


_UNROLL = 8                 # row-gather unroll factor (TILE is always a multiple of 128)
_MAX_SMEM_IDS = 64 * 1024   # per-pallas_call cap on each scalar-prefetched ID array:
                            # 1-D SMEM arrays pad to next_pow2(4N) bytes, so 64K int32
                            # -> 256 KiB each, well inside the ~1 MiB-class SMEM budget.


def _listmf_kernel(uid_sref, iid_sref,          # scalar-prefetched index refs (SMEM)
                   utab_ref, itab_ref,          # embedding tables (VMEM-resident)
                   pred_ref,                    # (1, TILE) lane-dense output block
                   ubuf_ref, ibuf_ref,          # (TILE, E) VMEM gather scratch
                   *, tile):
    base = pl.program_id(0) * tile

    # True row gather, unrolled by _UNROLL so loads/stores from consecutive
    # rows can be packed into the same bundles (2 vld + 1(+1) vst slots/cycle)
    # instead of serializing at ~5-10 cycles per single-row copy.
    def gather_chunk(c, carry):
        t0 = pl.multiple_of(c * _UNROLL, _UNROLL)
        for j in range(_UNROLL):                      # Python unroll
            t = t0 + j
            u = uid_sref[base + t]
            v = iid_sref[base + t]
            ubuf_ref[pl.ds(t, 1), :] = utab_ref[pl.ds(u, 1), :]
            ibuf_ref[pl.ds(t, 1), :] = itab_ref[pl.ds(v, 1), :]
        return carry

    lax.fori_loop(0, tile // _UNROLL, gather_chunk, 0)

    # TODO(synk): for small/moderate tables, benchmark an MXU one-hot gather
    # (broadcasted_iota == id, then onehot @ table in f32) or jnp.take against
    # this vld/vst-bound loop; on v5e (single vst slot per bundle) fusing user
    # and item rows into one (TILE, 2E) scratch store would halve store count.

    # pred = (user * item).sum(-1), vectorized over the tile.  Rows are upcast
    # to f32 here so the tables can be passed in their native dtype (no
    # per-call full-table copy in the wrapper).  On v5e keep tables f32.
    prod = ubuf_ref[...].astype(jnp.float32) * ibuf_ref[...].astype(jnp.float32)
    pred_ref[...] = jnp.sum(prod, axis=-1).reshape(1, tile)   # lane-dense store


def _pick_tile(n):
    """Lane-dense tile size over the flattened B*L axis.

    Multiple of 128 (full unmasked vst), up to 2048 to amortize per-grid-step
    overhead, and capped so the grid has >= 2 steps once the padded extent is
    >= 256 so the "parallel" dimension semantics can engage both v7x cores.
    """
    n128 = pl.cdiv(n, 128) * 128
    if n128 <= 128:
        return 128
    return min(2048, max(128, (n128 // 2 // 128) * 128))


def _listmf_chunk(user_tab, item_tab, uid, iid, tile):
    """Dot-product predictions for one flat chunk of (user, item) ID pairs."""
    (n,) = uid.shape
    NU, E = user_tab.shape
    NI, _ = item_tab.shape

    pbl = pl.cdiv(n, tile) * tile
    pad = pbl - n
    # Padded tail indices gather row 0 of each table (harmless, sliced off;
    # assumes NU >= 1 and NI >= 1).
    uid_p = jnp.pad(uid, (0, pad))
    iid_p = jnp.pad(iid, (0, pad))

    tab_bytes = (NU * E * user_tab.dtype.itemsize
                 + NI * E * item_tab.dtype.itemsize)
    scratch_bytes = tile * E * (user_tab.dtype.itemsize + item_tab.dtype.itemsize)
    out_bytes = 2 * (tile * 4)          # double-buffered (1, TILE) f32 output blocks
    # Tables are double-buffered by the default pipeline even though their
    # block index is constant, so budget 2x table bytes.
    vmem_limit = int(min(100 << 20,
                         max(32 << 20,
                             2 * tab_bytes + scratch_bytes + out_bytes + (4 << 20))))

    kernel = functools.partial(_listmf_kernel, tile=tile)

    pred_flat = pl.pallas_call(
        kernel,
        out_shape=jax.ShapeDtypeStruct((1, pbl), jnp.float32),
        grid_spec=pltpu.PrefetchScalarGridSpec(
            num_scalar_prefetch=2,                  # uid, iid -> SMEM
            grid=(pbl // tile,),
            in_specs=[
                # Whole-table VMEM residency with a constant block index: the
                # DMA is issued once and reused across grid steps.
                # TODO(synk): single-buffer these constant blocks
                # (pipeline_mode=pl.Buffered(1)) to halve their VMEM footprint;
                # kept on the default-buffered, conservatively-supported path
                # here.  Budgeting 2x table bytes, fall back to the HBM
                # row-gather path below roughly 12-16 MiB of tables on v7x
                # (64 MiB/TC) and ~2x that on v5e/v6e (128 MiB).
                # TODO(synk): for tables that do not fit VMEM at all, keep them
                # in HBM (memory_space=pl.ANY) and gather rows with per-row
                # async copies driven by the prefetched indices.
                pl.BlockSpec((NU, E), lambda i, u, v: (0, 0)),
                pl.BlockSpec((NI, E), lambda i, u, v: (0, 0)),
            ],
            out_specs=pl.BlockSpec((1, tile), lambda i, u, v: (0, i)),
            scratch_shapes=[
                pltpu.VMEM((tile, E), user_tab.dtype),
                pltpu.VMEM((tile, E), item_tab.dtype),
            ],
        ),
        compiler_params=pltpu.CompilerParams(
            dimension_semantics=("parallel",),      # megacore-shard the BL axis
            vmem_limit_bytes=vmem_limit),
        cost_estimate=pl.CostEstimate(
            flops=2 * pbl * E,
            transcendentals=0,
            bytes_accessed=tab_bytes + 2 * pbl * 4 + pbl * 4),
    )(uid_p, iid_p, user_tab, item_tab)

    return pred_flat[0, :n]


def listmf_forward(user_tab, item_tab, userID, itemID, rels, mode="train"):
    """Matches ListMF.forward semantics.

    mode == 'train' -> (pred[B,L] f32 with pads (rel == 20) set to -100,
                        rels[B,L] with pads set to 0)
    otherwise       -> pred[B,L] f32
    """
    B, L = userID.shape
    BL = B * L

    uid = userID.reshape(BL).astype(jnp.int32)
    iid = itemID.reshape(BL).astype(jnp.int32)

    tile = _pick_tile(min(BL, _MAX_SMEM_IDS))
    # Chunk the flattened list axis so the per-call scalar-prefetch length (and
    # hence the SMEM-resident ID arrays) stays bounded regardless of B*L.
    chunk = max(tile, (_MAX_SMEM_IDS // tile) * tile)

    pieces = [
        _listmf_chunk(user_tab, item_tab, uid[s:s + chunk], iid[s:s + chunk], tile)
        for s in range(0, BL, chunk)
    ]
    pred_flat = pieces[0] if len(pieces) == 1 else jnp.concatenate(pieces)
    pred = pred_flat.reshape(B, L)

    if mode == "train":
        pad_mask = rels == 20
        pred = jnp.where(pad_mask, jnp.float32(-100.0), pred)
        rels_out = jnp.where(pad_mask, jnp.zeros_like(rels), rels)
        return pred, rels_out
    return pred


if __name__ == "__main__":
    key = jax.random.PRNGKey(0)
    n_user, n_item, emb_size, init_range = 16, 32, 32, 0.1
    B, L = 2, 8

    k1, k2, k3, k4, k5 = jax.random.split(key, 5)
    # Deterministic "uniform_(-init_range, init_range)" init of the embeddings.
    user_tab = jax.random.uniform(k1, (n_user, emb_size), jnp.float32,
                                  minval=-init_range, maxval=init_range)
    item_tab = jax.random.uniform(k2, (n_item, emb_size), jnp.float32,
                                  minval=-init_range, maxval=init_range)

    userID = jax.random.randint(k3, (B, L), 0, n_user, dtype=jnp.int32)
    itemID = jax.random.randint(k4, (B, L), 0, n_item, dtype=jnp.int32)
    rels = jax.random.randint(k5, (B, L), 0, 5, dtype=jnp.int32)
    rels = rels.at[:, -2:].set(20)   # mark some list entries as padding (rel == 20)

    pred, rels_out = listmf_forward(user_tab, item_tab, userID, itemID, rels,
                                    mode="train")
    jax.block_until_ready((pred, rels_out))

    # Pure-JAX reference of the PyTorch forward (train mode).
    user_ref = user_tab[userID]
    items_ref = item_tab[itemID]
    ref_pred = (user_ref * items_ref).sum(-1)
    pad_mask = rels == 20
    ref_pred = jnp.where(pad_mask, -100.0, ref_pred)
    ref_rels = jnp.where(pad_mask, 0, rels)
    assert jnp.allclose(pred, ref_pred, rtol=1e-5, atol=1e-5)
    assert jnp.array_equal(rels_out, ref_rels)

    # Eval-mode path (no masking, no rels output).
    pred_eval = listmf_forward(user_tab, item_tab, userID, itemID, rels,
                               mode="eval")
    jax.block_until_ready(pred_eval)
    assert jnp.allclose(pred_eval, (user_ref * items_ref).sum(-1),
                        rtol=1e-5, atol=1e-5)

    # Larger, non-multiple-of-128 lists: exercises >= 2 grid steps (grid=3 at
    # TILE=128 for B*L=360) and the padded tail.
    B2, L2 = 4, 90
    uid2 = jax.random.randint(k3, (B2, L2), 0, n_user, dtype=jnp.int32)
    iid2 = jax.random.randint(k4, (B2, L2), 0, n_item, dtype=jnp.int32)
    rels2 = jnp.zeros((B2, L2), jnp.int32)
    pred2 = listmf_forward(user_tab, item_tab, uid2, iid2, rels2, mode="eval")
    jax.block_until_ready(pred2)
    ref2 = (user_tab[uid2] * item_tab[iid2]).sum(-1)
    assert jnp.allclose(pred2, ref2, rtol=1e-5, atol=1e-5)

    print("KERNEL_OK")
</pallas_src>

<mosaic_0001>
module attributes {stable_mosaic.version = 11 : i64} {
  func.func @_listmf_kernel(%arg0: i32, %arg1: memref<128xi32, #tpu.memory_space<smem>>, %arg2: memref<128xi32, #tpu.memory_space<smem>>, %arg3: memref<16x32xf32, #tpu.memory_space<vmem>>, %arg4: memref<32x32xf32, #tpu.memory_space<vmem>>, %arg5: memref<1x128xf32, #tpu.memory_space<vmem>>, %arg6: memref<128x32xf32, #tpu.memory_space<vmem>>, %arg7: memref<128x32xf32, #tpu.memory_space<vmem>>) attributes {dimension_semantics = [#tpu.dimension_semantics<parallel>], iteration_bounds = array<i64: 1>, scalar_prefetch = 2 : i64, scratch_operands = 2 : i64, tpu.core_type = #tpu.core_type<tc>, window_params = [{pipeline_mode = #tpu.pipeline_mode<synchronous>, transform_indices = @transform_0, window_bounds = array<i64: 16, 32>}, {pipeline_mode = #tpu.pipeline_mode<synchronous>, transform_indices = @transform_1, window_bounds = array<i64: 32, 32>}, {transform_indices = @transform_2, window_bounds = array<i64: 1, 128>}]} {
    %c128_i32 = arith.constant 128 : i32
    %0 = arith.muli %arg0, %c128_i32 : i32
    %c0_i32 = arith.constant 0 : i32
    %c16_i32 = arith.constant 16 : i32
    %1 = arith.addi %c0_i32, %c16_i32 : i32
    %c1_i32 = arith.constant 1 : i32
    scf.for %arg8 = %c0_i32 to %1 step %c1_i32  : i32 {
      %c8_i32 = arith.constant 8 : i32
      %8 = arith.muli %arg8, %c8_i32 : i32
      %9 = tpu.assume_multiple %8, 8 : i32
      %c0_i32_6 = arith.constant 0 : i32
      %10 = arith.addi %9, %c0_i32_6 : i32
      %11 = arith.addi %0, %10 : i32
      %12 = arith.index_cast %11 : i32 to index
      %13 = memref.load %arg1[%12] : memref<128xi32, #tpu.memory_space<smem>>
      %14 = arith.addi %0, %10 : i32
      %15 = arith.index_cast %14 : i32 to index
      %16 = memref.load %arg2[%15] : memref<128xi32, #tpu.memory_space<smem>>
      %17 = arith.index_cast %13 : i32 to index
      %c0_7 = arith.constant 0 : index
      %18 = vector.load %arg3[%17, %c0_7] : memref<16x32xf32, #tpu.memory_space<vmem>>, vector<1x32xf32>
      %19 = arith.index_cast %10 : i32 to index
      %c0_8 = arith.constant 0 : index
      %20 = vector.load %arg6[%19, %c0_8] : memref<128x32xf32, #tpu.memory_space<vmem>>, vector<1x32xf32>
      tpu.vector_store %arg6[%19, %c0_8], %18 {strides = array<i32>} : memref<128x32xf32, #tpu.memory_space<vmem>>, vector<1x32xf32>,
      %21 = arith.index_cast %16 : i32 to index
      %c0_9 = arith.constant 0 : index
      %22 = vector.load %arg4[%21, %c0_9] : memref<32x32xf32, #tpu.memory_space<vmem>>, vector<1x32xf32>
      %23 = arith.index_cast %10 : i32 to index
      %c0_10 = arith.constant 0 : index
      %24 = vector.load %arg7[%23, %c0_10] : memref<128x32xf32, #tpu.memory_space<vmem>>, vector<1x32xf32>
      tpu.vector_store %arg7[%23, %c0_10], %22 {strides = array<i32>} : memref<128x32xf32, #tpu.memory_space<vmem>>, vector<1x32xf32>,
      %c1_i32_11 = arith.constant 1 : i32
      %25 = arith.addi %9, %c1_i32_11 : i32
      %26 = arith.addi %0, %25 : i32
      %27 = arith.index_cast %26 : i32 to index
      %28 = memref.load %arg1[%27] : memref<128xi32, #tpu.memory_space<smem>>
      %29 = arith.addi %0, %25 : i32
      %30 = arith.index_cast %29 : i32 to index
      %31 = memref.load %arg2[%30] : memref<128xi32, #tpu.memory_space<smem>>
      %32 = arith.index_cast %28 : i32 to index
      %c0_12 = arith.constant 0 : index
      %33 = vector.load %arg3[%32, %c0_12] : memref<16x32xf32, #tpu.memory_space<vmem>>, vector<1x32xf32>
      %34 = arith.index_cast %25 : i32 to index
      %c0_13 = arith.constant 0 : index
      %35 = vector.load %arg6[%34, %c0_13] : memref<128x32xf32, #tpu.memory_space<vmem>>, vector<1x32xf32>
      tpu.vector_store %arg6[%34, %c0_13], %33 {strides = array<i32>} : memref<128x32xf32, #tpu.memory_space<vmem>>, vector<1x32xf32>,
      %36 = arith.index_cast %31 : i32 to index
      %c0_14 = arith.constant 0 : index
      %37 = vector.load %arg4[%36, %c0_14] : memref<32x32xf32, #tpu.memory_space<vmem>>, vector<1x32xf32>
      %38 = arith.index_cast %25 : i32 to index
      %c0_15 = arith.constant 0 : index
      %39 = vector.load %arg7[%38, %c0_15] : memref<128x32xf32, #tpu.memory_space<vmem>>, vector<1x32xf32>
      tpu.vector_store %arg7[%38, %c0_15], %37 {strides = array<i32>} : memref<128x32xf32, #tpu.memory_space<vmem>>, vector<1x32xf32>,
      %c2_i32 = arith.constant 2 : i32
      %40 = arith.addi %9, %c2_i32 : i32
      %41 = arith.addi %0, %40 : i32
      %42 = arith.index_cast %41 : i32 to index
      %43 = memref.load %arg1[%42] : memref<128xi32, #tpu.memory_space<smem>>
      %44 = arith.addi %0, %40 : i32
      %45 = arith.index_cast %44 : i32 to index
      %46 = memref.load %arg2[%45] : memref<128xi32, #tpu.memory_space<smem>>
      %47 = arith.index_cast %43 : i32 to index
      %c0_16 = arith.constant 0 : index
      %48 = vector.load %arg3[%47, %c0_16] : memref<16x32xf32, #tpu.memory_space<vmem>>, vector<1x32xf32>
      %49 = arith.index_cast %40 : i32 to index
      %c0_17 = arith.constant 0 : index
      %50 = vector.load %arg6[%49, %c0_17] : memref<128x32xf32, #tpu.memory_space<vmem>>, vector<1x32xf32>
      tpu.vector_store %arg6[%49, %c0_17], %48 {strides = array<i32>} : memref<128x32xf32, #tpu.memory_space<vmem>>, vector<1x32xf32>,
      %51 = arith.index_cast %46 : i32 to index
      %c0_18 = arith.constant 0 : index
      %52 = vector.load %arg4[%51, %c0_18] : memref<32x32xf32, #tpu.memory_space<vmem>>, vector<1x32xf32>
      %53 = arith.index_cast %40 : i32 to index
      %c0_19 = arith.constant 0 : index
      %54 = vector.load %arg7[%53, %c0_19] : memref<128x32xf32, #tpu.memory_space<vmem>>, vector<1x32xf32>
      tpu.vector_store %arg7[%53, %c0_19], %52 {strides = array<i32>} : memref<128x32xf32, #tpu.memory_space<vmem>>, vector<1x32xf32>,
      %c3_i32 = arith.constant 3 : i32
      %55 = arith.addi %9, %c3_i32 : i32
      %56 = arith.addi %0, %55 : i32
      %57 = arith.index_cast %56 : i32 to index
      %58 = memref.load %arg1[%57] : memref<128xi32, #tpu.memory_space<smem>>
      %59 = arith.addi %0, %55 : i32
      %60 = arith.index_cast %59 : i32 to index
      %61 = memref.load %arg2[%60] : memref<128xi32, #tpu.memory_space<smem>>
      %62 = arith.index_cast %58 : i32 to index
      %c0_20 = arith.constant 0 : index
      %63 = vector.load %arg3[%62, %c0_20] : memref<16x32xf32, #tpu.memory_space<vmem>>, vector<1x32xf32>
      %64 = arith.index_cast %55 : i32 to index
      %c0_21 = arith.constant 0 : index
      %65 = vector.load %arg6[%64, %c0_21] : memref<128x32xf32, #tpu.memory_space<vmem>>, vector<1x32xf32>
      tpu.vector_store %arg6[%64, %c0_21], %63 {strides = array<i32>} : memref<128x32xf32, #tpu.memory_space<vmem>>, vector<1x32xf32>,
      %66 = arith.index_cast %61 : i32 to index
      %c0_22 = arith.constant 0 : index
      %67 = vector.load %arg4[%66, %c0_22] : memref<32x32xf32, #tpu.memory_space<vmem>>, vector<1x32xf32>
      %68 = arith.index_cast %55 : i32 to index
      %c0_23 = arith.constant 0 : index
      %69 = vector.load %arg7[%68, %c0_23] : memref<128x32xf32, #tpu.memory_space<vmem>>, vector<1x32xf32>
      tpu.vector_store %arg7[%68, %c0_23], %67 {strides = array<i32>} : memref<128x32xf32, #tpu.memory_space<vmem>>, vector<1x32xf32>,
      %c4_i32 = arith.constant 4 : i32
      %70 = arith.addi %9, %c4_i32 : i32
      %71 = arith.addi %0, %70 : i32
      %72 = arith.index_cast %71 : i32 to index
      %73 = memref.load %arg1[%72] : memref<128xi32, #tpu.memory_space<smem>>
      %74 = arith.addi %0, %70 : i32
      %75 = arith.index_cast %74 : i32 to index
      %76 = memref.load %arg2[%75] : memref<128xi32, #tpu.memory_space<smem>>
      %77 = arith.index_cast %73 : i32 to index
      %c0_24 = arith.constant 0 : index
      %78 = vector.load %arg3[%77, %c0_24] : memref<16x32xf32, #tpu.memory_space<vmem>>, vector<1x32xf32>
      %79 = arith.index_cast %70 : i32 to index
      %c0_25 = arith.constant 0 : index
      %80 = vector.load %arg6[%79, %c0_25] : memref<128x32xf32, #tpu.memory_space<vmem>>, vector<1x32xf32>
      tpu.vector_store %arg6[%79, %c0_25], %78 {strides = array<i32>} : memref<128x32xf32, #tpu.memory_space<vmem>>, vector<1x32xf32>,
      %81 = arith.index_cast %76 : i32 to index
      %c0_26 = arith.constant 0 : index
      %82 = vector.load %arg4[%81, %c0_26] : memref<32x32xf32, #tpu.memory_space<vmem>>, vector<1x32xf32>
      %83 = arith.index_cast %70 : i32 to index
      %c0_27 = arith.constant 0 : index
      %84 = vector.load %arg7[%83, %c0_27] : memref<128x32xf32, #tpu.memory_space<vmem>>, vector<1x32xf32>
      tpu.vector_store %arg7[%83, %c0_27], %82 {strides = array<i32>} : memref<128x32xf32, #tpu.memory_space<vmem>>, vector<1x32xf32>,
      %c5_i32 = arith.constant 5 : i32
      %85 = arith.addi %9, %c5_i32 : i32
      %86 = arith.addi %0, %85 : i32
      %87 = arith.index_cast %86 : i32 to index
      %88 = memref.load %arg1[%87] : memref<128xi32, #tpu.memory_space<smem>>
      %89 = arith.addi %0, %85 : i32
      %90 = arith.index_cast %89 : i32 to index
      %91 = memref.load %arg2[%90] : memref<128xi32, #tpu.memory_space<smem>>
      %92 = arith.index_cast %88 : i32 to index
      %c0_28 = arith.constant 0 : index
      %93 = vector.load %arg3[%92, %c0_28] : memref<16x32xf32, #tpu.memory_space<vmem>>, vector<1x32xf32>
      %94 = arith.index_cast %85 : i32 to index
      %c0_29 = arith.constant 0 : index
      %95 = vector.load %arg6[%94, %c0_29] : memref<128x32xf32, #tpu.memory_space<vmem>>, vector<1x32xf32>
      tpu.vector_store %arg6[%94, %c0_29], %93 {strides = array<i32>} : memref<128x32xf32, #tpu.memory_space<vmem>>, vector<1x32xf32>,
      %96 = arith.index_cast %91 : i32 to index
      %c0_30 = arith.constant 0 : index
      %97 = vector.load %arg4[%96, %c0_30] : memref<32x32xf32, #tpu.memory_space<vmem>>, vector<1x32xf32>
      %98 = arith.index_cast %85 : i32 to index
      %c0_31 = arith.constant 0 : index
      %99 = vector.load %arg7[%98, %c0_31] : memref<128x32xf32, #tpu.memory_space<vmem>>, vector<1x32xf32>
      tpu.vector_store %arg7[%98, %c0_31], %97 {strides = array<i32>} : memref<128x32xf32, #tpu.memory_space<vmem>>, vector<1x32xf32>,
      %c6_i32 = arith.constant 6 : i32
      %100 = arith.addi %9, %c6_i32 : i32
      %101 = arith.addi %0, %100 : i32
      %102 = arith.index_cast %101 : i32 to index
      %103 = memref.load %arg1[%102] : memref<128xi32, #tpu.memory_space<smem>>
      %104 = arith.addi %0, %100 : i32
      %105 = arith.index_cast %104 : i32 to index
      %106 = memref.load %arg2[%105] : memref<128xi32, #tpu.memory_space<smem>>
      %107 = arith.index_cast %103 : i32 to index
      %c0_32 = arith.constant 0 : index
      %108 = vector.load %arg3[%107, %c0_32] : memref<16x32xf32, #tpu.memory_space<vmem>>, vector<1x32xf32>
      %109 = arith.index_cast %100 : i32 to index
      %c0_33 = arith.constant 0 : index
      %110 = vector.load %arg6[%109, %c0_33] : memref<128x32xf32, #tpu.memory_space<vmem>>, vector<1x32xf32>
      tpu.vector_store %arg6[%109, %c0_33], %108 {strides = array<i32>} : memref<128x32xf32, #tpu.memory_space<vmem>>, vector<1x32xf32>,
      %111 = arith.index_cast %106 : i32 to index
      %c0_34 = arith.constant 0 : index
      %112 = vector.load %arg4[%111, %c0_34] : memref<32x32xf32, #tpu.memory_space<vmem>>, vector<1x32xf32>
      %113 = arith.index_cast %100 : i32 to index
      %c0_35 = arith.constant 0 : index
      %114 = vector.load %arg7[%113, %c0_35] : memref<128x32xf32, #tpu.memory_space<vmem>>, vector<1x32xf32>
      tpu.vector_store %arg7[%113, %c0_35], %112 {strides = array<i32>} : memref<128x32xf32, #tpu.memory_space<vmem>>, vector<1x32xf32>,
      %c7_i32 = arith.constant 7 : i32
      %115 = arith.addi %9, %c7_i32 : i32
      %116 = arith.addi %0, %115 : i32
      %117 = arith.index_cast %116 : i32 to index
      %118 = memref.load %arg1[%117] : memref<128xi32, #tpu.memory_space<smem>>
      %119 = arith.addi %0, %115 : i32
      %120 = arith.index_cast %119 : i32 to index
      %121 = memref.load %arg2[%120] : memref<128xi32, #tpu.memory_space<smem>>
      %122 = arith.index_cast %118 : i32 to index
      %c0_36 = arith.constant 0 : index
      %123 = vector.load %arg3[%122, %c0_36] : memref<16x32xf32, #tpu.memory_space<vmem>>, vector<1x32xf32>
      %124 = arith.index_cast %115 : i32 to index
      %c0_37 = arith.constant 0 : index
      %125 = vector.load %arg6[%124, %c0_37] : memref<128x32xf32, #tpu.memory_space<vmem>>, vector<1x32xf32>
      tpu.vector_store %arg6[%124, %c0_37], %123 {strides = array<i32>} : memref<128x32xf32, #tpu.memory_space<vmem>>, vector<1x32xf32>,
      %126 = arith.index_cast %121 : i32 to index
      %c0_38 = arith.constant 0 : index
      %127 = vector.load %arg4[%126, %c0_38] : memref<32x32xf32, #tpu.memory_space<vmem>>, vector<1x32xf32>
      %128 = arith.index_cast %115 : i32 to index
      %c0_39 = arith.constant 0 : index
      %129 = vector.load %arg7[%128, %c0_39] : memref<128x32xf32, #tpu.memory_space<vmem>>, vector<1x32xf32>
      tpu.vector_store %arg7[%128, %c0_39], %127 {strides = array<i32>} : memref<128x32xf32, #tpu.memory_space<vmem>>, vector<1x32xf32>,
    }
    %c16_i32_0 = arith.constant 16 : i32
    %c0 = arith.constant 0 : index
    %c0_1 = arith.constant 0 : index
    %2 = vector.load %arg6[%c0, %c0_1] : memref<128x32xf32, #tpu.memory_space<vmem>>, vector<128x32xf32>
    %c0_2 = arith.constant 0 : index
    %c0_3 = arith.constant 0 : index
    %3 = vector.load %arg7[%c0_2, %c0_3] : memref<128x32xf32, #tpu.memory_space<vmem>>, vector<128x32xf32>
    %4 = arith.mulf %2, %3 : vector<128x32xf32>
    %cst = arith.constant dense<0.000000e+00> : vector<128xf32>
    %5 = vector.multi_reduction <add>, %4, %cst [1] : vector<128x32xf32> to vector<128xf32>
    %6 = vector.shape_cast %5 : vector<128xf32> to vector<1x128xf32>
    %c0_4 = arith.constant 0 : index
    %c0_5 = arith.constant 0 : index
    %7 = vector.load %arg5[%c0_4, %c0_5] : memref<1x128xf32, #tpu.memory_space<vmem>>, vector<1x128xf32>
    tpu.vector_store %arg5[%c0_4, %c0_5], %6 {strides = array<i32>} : memref<1x128xf32, #tpu.memory_space<vmem>>, vector<1x128xf32>,
    return
  }
  func.func @transform_0(%arg0: i32, %arg1: memref<128xi32, #tpu.memory_space<smem>>, %arg2: memref<128xi32, #tpu.memory_space<smem>>) -> (i32, i32) {
    %c0_i32 = arith.constant 0 : i32
    %c0_i32_0 = arith.constant 0 : i32
    %c0_i32_1 = arith.constant 0 : i32
    return %c0_i32, %c0_i32_0 : i32, i32
  }
  func.func @transform_1(%arg0: i32, %arg1: memref<128xi32, #tpu.memory_space<smem>>, %arg2: memref<128xi32, #tpu.memory_space<smem>>) -> (i32, i32) {
    %c0_i32 = arith.constant 0 : i32
    %c0_i32_0 = arith.constant 0 : i32
    %c0_i32_1 = arith.constant 0 : i32
    return %c0_i32, %c0_i32_0 : i32, i32
  }
  func.func @transform_2(%arg0: i32, %arg1: memref<128xi32, #tpu.memory_space<smem>>, %arg2: memref<128xi32, #tpu.memory_space<smem>>) -> (i32, i32) {
    %c0_i32 = arith.constant 0 : i32
    %c0_i32_0 = arith.constant 0 : i32
    return %c0_i32, %arg0 : i32, i32
  }
}

</mosaic_0001>

<bundles_post_ra>
// kernel: tpu_custom_call.1
= control target key start
LH: loop header
LB: loop body
LE: loop exit
PB: predicated region body
PF: predicated region fallthrough
CT: control target
= control target key end

     0   :  { %s807_s0 = inlined_call_operand.hbm [shape: s32[128], index: 0, kind: input, shape index: {}]   ;;  %s808_s2 = inlined_call_operand.hbm [shape: f32[16,32], index: 2, kind: input, shape index: {}]   ;;  %s809_s3 = inlined_call_operand.hbm [shape: f32[32,32], index: 3, kind: input, shape index: {}]   ;;  %s810_s4 = inlined_call_operand.hbm [shape: f32[1,128], index: 4, kind: output, shape index: {}]   ;;  %s811_s1 = inlined_call_operand.vmem [shape: s32[128], index: 1, kind: input, shape index: {}]  }
   0x1   :  { %s507_s17 = scalar_lea.hbm %s807_s0, 16 }
   0x2   :  { %p508_p0 = scmp.ne.s32.totalorder %s807_s0, %s507_s17  ;;  %p511_p1 = scmp.lt.u32.totalorder %s507_s17, %s807_s0 }
   0x4   :  { %p513_p2 = pnand %p511_p1, %p508_p0 }
   0x6   :  { %516 = shalt.err (!%p513_p2)  }
   0x7   :  { %s611_s22 = smov [#allocation5]   ;;  %s11_s27 = sshll.u32 %s811_s1, 4  ;;  %s12_s27 = int_to_ptr.vmem [resolvable:$true] %s11_s27 }
   0x8   :  { %10 = dma.hbm_to_smem %s807_s0, 16, %s611_s22, [#allocation4] }
   0x9   :  { %s517_s28 = scalar_lea.vmem %s12_s27, 16  ;;  %p522_p4 = scmp.lt.s32.totalorder %s12_s27, %s12_s27 }
   0xa   :  { %p518_p3 = scmp.ne.s32.totalorder %s12_s27, %s517_s28  ;;  %p523_p5 = scmp.lt.s32.totalorder %s517_s28, %s517_s28 }
   0xc   :  { %p524_p6 = por %p523_p5, %p522_p4 }
   0xe   :  { %p525_p7 = pnand %p524_p6, %p518_p3 }
  0x10   :  { %528 = shalt.err (!%p525_p7)  }
  0x11   :  { %s612_s29 = smov [#allocation6]  }
  0x12   :  { %14 = dma.vmem_to_smem %s12_s27, 16, %s612_s29, [#allocation4] }
  0x13   :  { %599 = dma.done.wait [#allocation4], 32 }
  0x14   :  { %600 = vsyncadd [#allocation4], 4294967264 }
  0x15   :  { %16 = sfence }
  0x16   :  { %17 = vsyncpa [#allocation8], 0 }
  0x17   :  { %18 = vsyncpa [#allocation11], 0 }
  0x18   :  { %19 = vsyncpa [#allocation9], 0  ;;  %s613_s0 = smov [#allocation7]   ;;  %s529_s6 = scalar_lea.hbm %s808_s2, 256 }
  0x19   :  { %s25_s30 = sshll.u32 %s613_s0, 4  ;;  %p530_p8 = scmp.ne.s32.totalorder %s808_s2, %s529_s6  ;;  %s26_s30 = int_to_ptr.vmem [resolvable:$true] %s25_s30 }
  0x1a   :  { %p533_p9 = scmp.lt.u32.totalorder %s529_s6, %s808_s2 }
  0x1c   :  { %p535_p10 = pnand %p533_p9, %p530_p8 }
  0x1e   :  { %538 = shalt.err (!%p535_p10)
}
  0x1f   :  { %s539_s11 = scalar_lea.vmem %s26_s30, 256  ;;  %p544_p12 = scmp.lt.s32.totalorder %s26_s30, %s26_s30 }
  0x20   :  { %p540_p11 = scmp.ne.s32.totalorder %s26_s30, %s539_s11  ;;  %p545_p13 = scmp.lt.s32.totalorder %s539_s11, %s539_s11 }
  0x22   :  { %p546_p0 = por %p545_p13, %p544_p12 }
  0x24   :  { %p547_p1 = pnand %p546_p0, %p540_p11 }
  0x26   :  { %550 = shalt.err (!%p547_p1)
}
  0x27   :  { %s614_s12 = smov 128   ;;  %s615_s13 = smov 8  }
  0x28   :  { %31 = dma.hbm_to_vmem [thread:$0]  %s808_s2, 256, %s26_s30, [#allocation8], %s614_s12, %s614_s12, %s615_s13  }
  0x29   :  { %s616_s16 = smov [#allocation10]   ;;  %s551_s20 = scalar_lea.hbm %s809_s3, 512 }
  0x2a   :  { %s37_s17 = sshll.u32 %s616_s16, 4  ;;  %p552_p2 = scmp.ne.s32.totalorder %s809_s3, %s551_s20  ;;  %s38_s17 = int_to_ptr.vmem [resolvable:$true] %s37_s17 }
  0x2b   :  { %p555_p3 = scmp.lt.u32.totalorder %s551_s20, %s809_s3 }
  0x2d   :  { %p557_p4 = pnand %p555_p3, %p552_p2 }
  0x2f   :  { %560 = shalt.err (!%p557_p4)
}
  0x30   :  { %s561_s25 = scalar_lea.vmem %s38_s17, 512  ;;  %p566_p6 = scmp.lt.s32.totalorder %s38_s17, %s38_s17 }
  0x31   :  { %p562_p5 = scmp.ne.s32.totalorder %s38_s17, %s561_s25  ;;  %p567_p7 = scmp.lt.s32.totalorder %s561_s25, %s561_s25 }
  0x33   :  { %p568_p8 = por %p567_p7, %p566_p6 }
  0x35   :  { %p569_p9 = pnand %p568_p8, %p562_p5 }
  0x37   :  { %572 = shalt.err (!%p569_p9)
}
  0x38   :  { %43 = dma.hbm_to_vmem [thread:$0]  %s809_s3, 512, %s38_s17, [#allocation11], %s614_s12, %s614_s12, %s615_s13  }
  0x39   :  { %601 = dma.done.wait [#allocation8], 256  }
  0x3a   :  { %602 = vsyncadd [#allocation8], 4294967040 }
  0x3b   :  { %603 = dma.done.wait [#allocation11], 512  }
  0x3c   :  { %604 = vsyncadd [#allocation11], 4294966784  ;;  %s682_s27 = smov 0  }
  0x3d LB: > { %s688_s28 = sshll.u32 %s609_s27, 3  ;;  %vm64_vm0 = vcmask 253952   ;;  %s56_s27 = sadd.s32 1, %s609_s27   ;;  %s609_s27 = sphi %s682_s27, %s56_s27  }
  0x3e   : > { %s59_s3 = sld [smem:[#allocation5 + %s688_s28]]  ;;  %s70_s0 = sadd.s32 1, %s688_s28 }
  0x3f   : > { %s60_s29 = sld [smem:[#allocation6 + %s688_s28]]  ;;  %s82_s30 = sadd.s32 2, %s688_s28 }
  0x40   : > { %s72_s1 = sld [smem:[#allocation5 + %s70_s0]]  ;;  %s94_s8 = sadd.s32 3, %s688_s28 }
  0x41   : > { %s73_s5 = sld [smem:[#allocation6 + %s70_s0]]  ;;  %s106_s9 = sadd.s32 4, %s688_s28 }
  0x42   : > { %s84_s6 = sld [smem:[#allocation5 + %s82_s30]]  ;;  %s699_s13 = scalar_lea.vmem [#allocation2], %s688_s28 }
  0x43   : > { %s85_s7 = sld [smem:[#allocation6 + %s82_s30]]  ;;  %s704_s17 = scalar_lea.vmem [#allocation3], %s688_s28 }
  0x44   : > { %s96_s10 = sld [smem:[#allocation5 + %s94_s8]]  ;;  %s61_s11 = scalar_lea.vmem [#allocation7], %s59_s3 }
  0x45   : > { %v62_v0 = vld [vmem:[%s61_s11] sm:$0x1]  ;;  %s696_s12 = sld [smem:[#allocation6 + %s94_s8]]  ;;  %s66_s14 = scalar_lea.vmem [#allocation10], %s60_s29 }
  0x46   : > { %65 = vst.msk [vmem:[%s699_s13] sm:$0x1] %vm64_vm0, %v62_v0  ;;  %v67_v1 = vld [vmem:[%s66_s14] sm:$0x1]  ;;  %s108_s15 = sld [smem:[#allocation5 + %s106_s9]]  ;;  %s74_s18 = scalar_lea.vmem [#allocation7], %s72_s1 }
  0x47   : > { %s109_s16 = sld [smem:[#allocation6 + %s106_s9]]  ;;  %69 = vst.msk [vmem:[%s704_s17] sm:$0x1] %vm64_vm0, %v67_v1  ;;  %v75_v2 = vld [vmem:[%s74_s18] sm:$0x1]  ;;  %s78_s19 = scalar_lea.vmem [#allocation10], %s73_s5 }
  0x48   : > { %v79_v3 = vld [vmem:[%s78_s19] sm:$0x1]  ;;  %465 = vst.msk [vmem:[%s699_s13 + $0x1] sm:$0x1] %vm64_vm0, %v75_v2  ;;  %s86_s20 = scalar_lea.vmem [#allocation7], %s84_s6  ;;  %s118_s22 = sadd.s32 5, %s688_s28 }
  0x49   : > { %467 = vst.msk [vmem:[%s704_s17 + $0x1] sm:$0x1] %vm64_vm0, %v79_v3  ;;  %v87_v4 = vld [vmem:[%s86_s20] sm:$0x1]  ;;  %s90_s21 = scalar_lea.vmem [#allocation10], %s85_s7  ;;  %s130_s23 = sadd.s32 6, %s688_s28 }
  0x4a   : > { %v91_v5 = vld [vmem:[%s90_s21] sm:$0x1]  ;;  %469 = vst.msk [vmem:[%s699_s13 + $0x2] sm:$0x1] %vm64_vm0, %v87_v4  ;;  %s120_s24 = sld [smem:[#allocation5 + %s118_s22]]  ;;  %s98_s25 = scalar_lea.vmem [#allocation7], %s96_s10 }
  0x4b   : > { %471 = vst.msk [vmem:[%s704_s17 + $0x2] sm:$0x1] %vm64_vm0, %v91_v5  ;;  %v99_v6 = vld [vmem:[%s98_s25] sm:$0x1]  ;;  %s121_s2 = sld [smem:[#allocation6 + %s118_s22]]  ;;  %s102_s26 = scalar_lea.vmem [#allocation10], %s696_s12 }
  0x4c   : > { %473 = vst.msk [vmem:[%s699_s13 + $0x3] sm:$0x1] %vm64_vm0, %v99_v6  ;;  %v103_v7 = vld [vmem:[%s102_s26] sm:$0x1]  ;;  %s110_s3 = scalar_lea.vmem [#allocation7], %s108_s15  ;;  %s132_s0 = sld [smem:[#allocation5 + %s130_s23]] }
  0x4d   : > { %475 = vst.msk [vmem:[%s704_s17 + $0x3] sm:$0x1] %vm64_vm0, %v103_v7  ;;  %v111_v8 = vld [vmem:[%s110_s3] sm:$0x1]  ;;  %s114_s29 = scalar_lea.vmem [#allocation10], %s109_s16  ;;  %s133_s30 = sld [smem:[#allocation6 + %s130_s23]] }
  0x4e   : > { %v115_v9 = vld [vmem:[%s114_s29] sm:$0x1]  ;;  %477 = vst.msk [vmem:[%s699_s13 + $0x4] sm:$0x1] %vm64_vm0, %v111_v8  ;;  %s142_s1 = sadd.s32 7, %s688_s28  ;;  %p53_p10 = scmp.ge.s32.totalorder %s56_s27, 16  }
  0x4f   : > { %479 = vst.msk [vmem:[%s704_s17 + $0x4] sm:$0x1] %vm64_vm0, %v115_v9  ;;  %s144_s5 = sld [smem:[#allocation5 + %s142_s1]]  ;;  %vm202_vm1 = vcmask (%p53_p10), 261120   ;;  %vm278_vm2 = vcmask (%p53_p10), 130112   ;;  %vm285_vm3 = vcmask (%p53_p10), 195712  }
  0x50   : > { %s145_s6 = sld [smem:[#allocation6 + %s142_s1]]  ;;  %s122_s7 = scalar_lea.vmem [#allocation7], %s120_s24  ;;  %vm292_vm4 = vcmask (%p53_p10), 261312   ;;  %vm299_vm5 = vcmask (%p53_p10), 326912   ;;  %vm306_vm6 = vcmask (%p53_p10), 392512   ;;  %vm313_vm7 = vcmask (%p53_p10), 458112  }
  0x51   : > { %v123_v10 = vld [vmem:[%s122_s7] sm:$0x1]  ;;  %s126_s8 = scalar_lea.vmem [#allocation10], %s121_s2  ;;  %vm320_vm8 = vcmask (%p53_p10), 523712   ;;  %vm327_vm9 = vcmask (%p53_p10), 589312   ;;  %vm334_vm10 = vcmask (%p53_p10), 654912  }
  0x52   : > { %481 = vst.msk [vmem:[%s699_s13 + $0x5] sm:$0x1] %vm64_vm0, %v123_v10  ;;  %v127_v11 = vld [vmem:[%s126_s8] sm:$0x1]  ;;  %s134_s9 = scalar_lea.vmem [#allocation7], %s132_s0  ;;  %55 = sbr.rel (!%p53_p10) target bundleno = 61 (0x3d), region = 75 }
  0x53   : > { %483 = vst.msk [vmem:[%s704_s17 + $0x5] sm:$0x1] %vm64_vm0, %v127_v11  ;;  %v135_v12 = vld [vmem:[%s134_s9] sm:$0x1]  ;;  %s138_s10 = scalar_lea.vmem [#allocation10], %s133_s30  ;;  %vm341_vm11 = vcmask (%p53_p10), 720512  }
  0x54   : > { %v139_v13 = vld [vmem:[%s138_s10] sm:$0x1]  ;;  %485 = vst.msk [vmem:[%s699_s13 + $0x6] sm:$0x1] %vm64_vm0, %v135_v12  ;;  %vm348_vm12 = vcmask (%p53_p10), 786112   ;;  %vm355_vm13 = vcmask (%p53_p10), 851712  }
  0x55   : > { %487 = vst.msk [vmem:[%s704_s17 + $0x6] sm:$0x1] %vm64_vm0, %v139_v13  ;;  %s146_s28 = scalar_lea.vmem [#allocation7], %s144_s5  ;;  %vm362_vm14 = vcmask (%p53_p10), 917312   ;;  %vm369_vm15 = vcmask (%p53_p10), 982912   ;;  %s617_s27 = smov (%p53_p10), [#allocation12]  }
  0x56   : > { %v147_v14 = vld [vmem:[%s146_s28] sm:$0x1]  ;;  %s150_s11 = scalar_lea.vmem [#allocation10], %s145_s6  ;;  %s386_s12 = sshll.u32 (%p53_p10), %s617_s27, 4  ;;  %s387_s12 = int_to_ptr.vmem [resolvable:$true] %s386_s12 }
  0x57   : > { %v151_v15 = vld [vmem:[%s150_s11] sm:$0x1]  ;;  %489 = vst.msk [vmem:[%s699_s13 + $0x7] sm:$0x1] %vm64_vm0, %v147_v14  ;;  %s573_s13 = scalar_lea.vmem (%p53_p10), %s387_s12, 16  ;;  %s577_s14 = scalar_lea.vmem (%p53_p10), %s387_s12, 32 }
  0x58   : > { %491 = vst.msk [vmem:[%s704_s17 + $0x7] sm:$0x1] %vm64_vm0, %v151_v15  ;;  %vm376_vm0 = vcmask (%p53_p10), 1048512   ;;  %p574_p11 = scmp.ne.s32.totalorder (%p53_p10), %s387_s12, %s573_s13  ;;  %p578_p12 = scmp.lt.s32.totalorder (%p53_p10), %s387_s12, %s387_s12 }
  0x59   :  { %p579_p13 = scmp.lt.s32.totalorder %s577_s14, %s573_s13 }
  0x5b   :  { %p580_p0 = por %p579_p13, %p578_p12 }
  0x5d   :  { %p581_p1 = pnand %p580_p0, %p574_p11 }
  0x5e   :  { %v154_v16 = vld [vmem:[#allocation2] sm:$0xff]  ;;  %v156_v18 = vld [vmem:[#allocation2 + $0x10] sm:$0xff]  ;;  %v155_v21 = vld [vmem:[#allocation2 + $0x8] sm:$0xff] }
  0x5f   :  { %v170_v17 = vld [vmem:[#allocation3] sm:$0xff]  ;;  %v172_v20 = vld [vmem:[#allocation3 + $0x10] sm:$0xff]  ;;  %v171_v22 = vld [vmem:[#allocation3 + $0x8] sm:$0xff] }
  0x60   :  { %v186_v19 = vmul.f32 %v170_v17, %v154_v16  ;;  %v188_v23 = vmul.f32 %v172_v20, %v156_v18  ;;  %v187_v24 = vmul.f32 %v171_v22, %v155_v21  ;;  %v157_v25 = vld [vmem:[#allocation2 + $0x18] sm:$0xff]  ;;  %v158_v27 = vld [vmem:[#allocation2 + $0x20] sm:$0xff]  ;;  %v159_v31 = vld [vmem:[#allocation2 + $0x28] sm:$0xff]  ;;  %v267_v16 = vlaneseq }
  0x61   :  { %v173_v26 = vld [vmem:[#allocation3 + $0x18] sm:$0xff]  ;;  %v174_v30 = vld [vmem:[#allocation3 + $0x20] sm:$0xff]  ;;  %v175_v32 = vld [vmem:[#allocation3 + $0x28] sm:$0xff] }
  0x62   :  { %v203_v28 = vsel %vm202_vm1, %v186_v19, 0.0  ;;  %v189_v29 = vmul.f32 %v173_v26, %v157_v25  ;;  %v209_v33 = vsel %vm202_vm1, %v188_v23, 0.0  ;;  %v206_v34 = vsel %vm202_vm1, %v187_v24, 0.0  ;;  %v160_v38 = vld [vmem:[#allocation2 + $0x30] sm:$0xff]  ;;  %v161_v40 = vld [vmem:[#allocation2 + $0x38] sm:$0xff]  ;;  %v162_v46 = vld [vmem:[#allocation2 + $0x40] sm:$0xff] }
  0x63   :  { %204 = vadd.xlane.f32.xlu0 %v203_v28  ;;  %210 = vadd.xlane.f32.xlu1 %v209_v33  ;;  %v190_v35 = vmul.f32 %v174_v30, %v158_v27  ;;  %v191_v37 = vmul.f32 %v175_v32, %v159_v31  ;;  %v176_v39 = vld [vmem:[#allocation3 + $0x30] sm:$0xff]  ;;  %v177_v41 = vld [vmem:[#allocation3 + $0x38] sm:$0xff]  ;;  %v178_v47 = vld [vmem:[#allocation3 + $0x40] sm:$0xff]  ;;  %v759_v17 = vand.u32 127, %v267_v16  ;;  %v761_v18 = vshrl.u32 %v267_v16, 7 }
  0x64   :  { %v212_v36 = vsel %vm202_vm1, %v189_v29, 0.0  ;;  %v192_v43 = vmul.f32 %v176_v39, %v160_v38  ;;  %v193_v45 = vmul.f32 %v177_v41, %v161_v40  ;;  %v163_v48 = vld [vmem:[#allocation2 + $0x48] sm:$0xff]  ;;  %v194_v51 = vmul.f32 %v178_v47, %v162_v46  ;;  %v164_v54 = vld [vmem:[#allocation2 + $0x50] sm:$0xff]  ;;  %v165_v56 = vld [vmem:[#allocation2 + $0x58] sm:$0xff] }
  0x65   :  { %v215_v42 = vsel %vm202_vm1, %v190_v35, 0.0  ;;  %v218_v44 = vsel %vm202_vm1, %v191_v37, 0.0  ;;  %v179_v49 = vld [vmem:[#allocation3 + $0x48] sm:$0xff]  ;;  %v180_v55 = vld [vmem:[#allocation3 + $0x50] sm:$0xff]  ;;  %v181_v57 = vld [vmem:[#allocation3 + $0x58] sm:$0xff]  ;;  %v273_v19 = vadd.s32 4294967288, %v759_v17  ;;  %v271_v23 = vsub.s32 %v759_v17, %v761_v18 }
  0x66   :  { %v221_v50 = vsel %vm202_vm1, %v192_v43, 0.0  ;;  %v224_v52 = vsel %vm202_vm1, %v193_v45, 0.0  ;;  %v195_v53 = vmul.f32 %v179_v49, %v163_v48  ;;  %v227_v58 = vsel %vm202_vm1, %v194_v51, 0.0  ;;  %v166_v62 = vld [vmem:[#allocation2 + $0x60] sm:$0xff]  ;;  %v167_v0 = vld [vmem:[#allocation2 + $0x68] sm:$0xff]  ;;  %v168_v6 = vld [vmem:[#allocation2 + $0x70] sm:$0xff] }
  0x67   :  { %207 = vadd.xlane.f32.xlu0 %v206_v34  ;;  %213 = vadd.xlane.f32.xlu1 %v212_v36  ;;  %v196_v59 = vmul.f32 %v180_v55, %v164_v54  ;;  %v197_v61 = vmul.f32 %v181_v57, %v165_v56  ;;  %v182_v63 = vld [vmem:[#allocation3 + $0x60] sm:$0xff]  ;;  %v183_v1 = vld [vmem:[#allocation3 + $0x68] sm:$0xff]  ;;  %v184_v7 = vld [vmem:[#allocation3 + $0x70] sm:$0xff]  ;;  %v280_v20 = vadd.s32 4294967280, %v759_v17  ;;  %v287_v21 = vadd.s32 4294967272, %v759_v17 }
  0x68   :  { %v230_v60 = vsel %vm202_vm1, %v195_v53, 0.0  ;;  %v198_v3 = vmul.f32 %v182_v63, %v166_v62  ;;  %v199_v5 = vmul.f32 %v183_v1, %v167_v0  ;;  %v169_v8 = vld [vmem:[#allocation2 + $0x78] sm:$0xff]  ;;  %v200_v11 = vmul.f32 %v184_v7, %v168_v6 }
  0x69   :  { %v233_v2 = vsel %vm202_vm1, %v196_v59, 0.0  ;;  %v236_v4 = vsel %vm202_vm1, %v197_v61, 0.0  ;;  %v185_v9 = vld [vmem:[#allocation3 + $0x78] sm:$0xff]  ;;  %v276_v25 = vsub.s32 %v273_v19, %v761_v18  ;;  %v294_v26 = vadd.s32 4294967264, %v759_v17 }
  0x6a   :  { %v239_v10 = vsel %vm202_vm1, %v198_v3, 0.0  ;;  %v242_v12 = vsel %vm202_vm1, %v199_v5, 0.0  ;;  %v201_v13 = vmul.f32 %v185_v9, %v169_v8  ;;  %v245_v14 = vsel %vm202_vm1, %v200_v11, 0.0 }
  0x6b   :  { %216 = vadd.xlane.f32.xlu0 %v215_v42  ;;  %219 = vadd.xlane.f32.xlu1 %v218_v44  ;;  %v283_v27 = vsub.s32 %v280_v20, %v761_v18  ;;  %v290_v28 = vsub.s32 %v287_v21, %v761_v18  ;;  %v301_v29 = vadd.s32 4294967256, %v759_v17  ;;  %v297_v34 = vsub.s32 %v294_v26, %v761_v18 }
  0x6c   :  { %v248_v15 = vsel %vm202_vm1, %v201_v13, 0.0  ;;  %v308_v35 = vadd.s32 4294967248, %v759_v17  ;;  %v315_v39 = vadd.s32 4294967240, %v759_v17  ;;  %v322_v47 = vadd.s32 4294967232, %v759_v17 }
  0x6d   :  { %v304_v38 = vsub.s32 %v301_v29, %v761_v18  ;;  %v336_v56 = vadd.s32 4294967216, %v759_v17  ;;  %v357_v6 = vadd.s32 4294967192, %v759_v17  ;;  %v371_v16 = vadd.s32 4294967176, %v759_v17 }
  0x6e   :  { %v311_v46 = vsub.s32 %v308_v35, %v761_v18  ;;  %v318_v49 = vsub.s32 %v315_v39, %v761_v18  ;;  %v325_v55 = vsub.s32 %v322_v47, %v761_v18 }
  0x6f   :  { %222 = vadd.xlane.f32.xlu0 %v221_v50  ;;  %225 = vadd.xlane.f32.xlu1 %v224_v52  ;;  %v329_v50 = vadd.s32 4294967224, %v759_v17  ;;  %v339_v1 = vsub.s32 %v336_v56, %v761_v18  ;;  %v374_v26 = vsub.s32 %v371_v16, %v761_v18 }
  0x71   :  { %v332_v59 = vsub.s32 %v329_v50, %v761_v18 }
  0x73   :  { %228 = vadd.xlane.f32.xlu0 %v227_v58  ;;  %231 = vadd.xlane.f32.xlu1 %v230_v60  ;;  %v343_v60 = vadd.s32 4294967208, %v759_v17 }
  0x75   :  { %v346_v5 = vsub.s32 %v343_v60, %v761_v18 }
  0x77   :  { %234 = vadd.xlane.f32.xlu0 %v233_v2  ;;  %237 = vadd.xlane.f32.xlu1 %v236_v4  ;;  %v350_v2 = vadd.s32 4294967200, %v759_v17 }
  0x79   :  { %v353_v11 = vsub.s32 %v350_v2, %v761_v18 }
  0x7b   :  { %240 = vadd.xlane.f32.xlu0 %v239_v10  ;;  %243 = vadd.xlane.f32.xlu1 %v242_v12  ;;  %v364_v12 = vadd.s32 4294967184, %v759_v17 }
  0x7f   :  { %246 = vadd.xlane.f32.xlu0 %v245_v14  ;;  %249 = vadd.xlane.f32.xlu1 %v248_v15  ;;  %v360_v15 = vsub.s32 %v357_v6, %v761_v18 }
  0xf0   :  { %v205_v22 = vpop.xlane.xlu0 %204  ;;  %v211_v24 = vpop.xlane.xlu1 %210 }
  0xf1   :  { %v272_v31 = vrot.slane %v205_v22, %v271_v23  ;;  %v284_v36 = vrot.slane %v211_v24, %v283_v27  ;;  %v367_v23 = vsub.s32 %v364_v12, %v761_v18 }
  0xf4   :  { %v208_v30 = vpop.xlane.xlu0 %207  ;;  %v214_v33 = vpop.xlane.xlu1 %213 }
  0xf5   :  { %v277_v32 = vrot.slane %v208_v30, %v276_v25  ;;  %v291_v37 = vrot.slane %v214_v33, %v290_v28 }
  0xf7   :  { %v279_v40 = vsel %vm278_vm2, %v277_v32, %v272_v31 }
  0xf8   :  { %v286_v41 = vsel %vm285_vm3, %v284_v36, %v279_v40  ;;  %v217_v42 = vpop.xlane.xlu0 %216  ;;  %v220_v45 = vpop.xlane.xlu1 %219 }
  0xf9   :  { %v293_v43 = vsel %vm292_vm4, %v291_v37, %v286_v41  ;;  %v298_v44 = vrot.slane %v217_v42, %v297_v34  ;;  %v305_v48 = vrot.slane %v220_v45, %v304_v38 }
  0xfb   :  { %v300_v51 = vsel %vm299_vm5, %v298_v44, %v293_v43 }
  0xfc   :  { %v223_v52 = vpop.xlane.xlu0 %222  ;;  %v226_v54 = vpop.xlane.xlu1 %225  ;;  %v307_v57 = vsel %vm306_vm6, %v305_v48, %v300_v51 }
  0xfd   :  { %v312_v53 = vrot.slane %v223_v52, %v311_v46  ;;  %v319_v58 = vrot.slane %v226_v54, %v318_v49 }
  0xff   :  { %v314_v61 = vsel %vm313_vm7, %v312_v53, %v307_v57 }
 0x100   :  { %v229_v62 = vpop.xlane.xlu0 %228  ;;  %v232_v0 = vpop.xlane.xlu1 %231  ;;  %v321_v3 = vsel %vm320_vm8, %v319_v58, %v314_v61 }
 0x101   :  { %v326_v63 = vrot.slane %v229_v62, %v325_v55  ;;  %v333_v4 = vrot.slane %v232_v0, %v332_v59 }
 0x103   :  { %v328_v7 = vsel %vm327_vm9, %v326_v63, %v321_v3 }
 0x104   :  { %v235_v8 = vpop.xlane.xlu0 %234  ;;  %v238_v10 = vpop.xlane.xlu1 %237  ;;  %v335_v13 = vsel %vm334_vm10, %v333_v4, %v328_v7 }
 0x105   :  { %v340_v9 = vrot.slane %v235_v8, %v339_v1  ;;  %v347_v14 = vrot.slane %v238_v10, %v346_v5 }
 0x107   :  { %v342_v19 = vsel %vm341_vm11, %v340_v9, %v335_v13 }
 0x108   :  { %v241_v20 = vpop.xlane.xlu0 %240  ;;  %v244_v22 = vpop.xlane.xlu1 %243  ;;  %v349_v24 = vsel %vm348_vm12, %v347_v14, %v342_v19 }
 0x109   :  { %v354_v21 = vrot.slane %v241_v20, %v353_v11  ;;  %v361_v25 = vrot.slane %v244_v22, %v360_v15 }
 0x10b   :  { %v356_v27 = vsel %vm355_vm13, %v354_v21, %v349_v24 }
 0x10c   :  { %v247_v28 = vpop.xlane.xlu0 %246  ;;  %v250_v17 = vpop.xlane.xlu1 %249  ;;  %v363_v30 = vsel %vm362_vm14, %v361_v25, %v356_v27 }
 0x10d   :  { %v368_v29 = vrot.slane %v247_v28, %v367_v23  ;;  %v375_v31 = vrot.slane %v250_v17, %v374_v26 }
 0x10f   :  { %v370_v32 = vsel %vm369_vm15, %v368_v29, %v363_v30 }
 0x110   :  { %v377_v33 = vsel %vm376_vm0, %v375_v31, %v370_v32 }
 0x111   :  { %379 = vst [vmem:[#allocation12] sm:$0x1] %v377_v33 }
 0x112   :  { %584 = shalt.err (!%p581_p1)
}
 0x113   :  { %s585_s17 = scalar_lea.hbm %s810_s4, 16 }
 0x114   :  { %p586_p2 = scmp.ne.s32.totalorder %s810_s4, %s585_s17  ;;  %p589_p3 = scmp.lt.u32.totalorder %s585_s17, %s810_s4 }
 0x116   :  { %p591_p4 = pnand %p589_p3, %p586_p2 }
 0x118   :  { %594 = shalt.err (!%p591_p4)
}
 0x119   :  { %389 = dma.vmem_to_hbm [thread:$0]  %s387_s12, 16, %s810_s4, [#allocation9]  }
 0x11a   :  { %605 = dma.done.wait [#allocation9], 16  }
 0x11b   :  { %606 = vsyncadd [#allocation9], 4294967280 }
 0x11c   :  { %393 = vsyncpa [#allocation8], 1 }
 0x11d   :  { %394 = vsyncpa [#allocation11], 1 }
 0x11e   :  { %395 = vsyncpa [#allocation9], 1 }

</bundles_post_ra>
